<compile_context>
chip_gen: v6e
topology: v6e:2x2x1
jax: 0.10.0
libtpu: 0.0.40
codegen_flags: <defaults>
</compile_context>

<pallas_src>
import functools

import numpy as np
import jax
import jax.numpy as jnp
from jax.experimental import pallas as pl
from jax.experimental.pallas import tpu as pltpu


def _sideout_kernel(mask_ref, x_ref, w1_ref, b1_ref, w2_ref, b2_ref, o_ref, *, W):
    # mask_ref : (9, H*W) f32     host-precomputed padding=1 boundary masks (0/1)
    # x_ref    : (1, Cin, H*W)    one image, channels on sublanes, H*W on lanes
    # w1_ref   : (Cin, 9*Cin)     3x3 conv weights, BN scale folded in
    # b1_ref   : (Cin, 1)         folded BN bias
    # w2_ref   : (Cout, Cin)      1x1 conv weights (transposed)
    # b2_ref   : (Cout, 1)        1x1 conv bias
    # o_ref    : (1, Cout, H*W)
    x2d = x_ref[0].astype(jnp.float32)          # (Cin, H*W)

    # Build the im2col patch matrix (9*Cin, H*W): each 3x3 tap is a static lane
    # roll of the flattened image times its precomputed boundary mask (this
    # implements the padding=1 zeros).  The center tap needs neither.
    taps = []
    k = 0
    for ky in range(3):
        for kx in range(3):
            dy, dx = ky - 1, kx - 1
            d = dy * W + dx
            if d == 0:
                taps.append(x2d)
            else:
                shifted = jnp.roll(x2d, shift=-d, axis=1)          # lane rotate (XLU)
                taps.append(shifted * mask_ref[pl.ds(k, 1), :])    # one vmul (VPU)
            k += 1
    patches = jnp.concatenate(taps, axis=0)     # (9*Cin, H*W) f32

    # conv1 (3x3, BN scale already folded into the weights) as ONE MXU dot.
    y = jnp.dot(w1_ref[...], patches.astype(w1_ref.dtype),
                preferred_element_type=jnp.float32)                # (Cin, H*W) f32
    # Folded BN bias + ReLU (kept in f32: v5e VPU has no bf16 path).
    y = jnp.maximum(y + b1_ref[...], 0.0)

    # conv2 (1x1) + bias == dense layer over channels, lane-dense output.
    z = jnp.dot(w2_ref[...], y.astype(w2_ref.dtype),
                preferred_element_type=jnp.float32) + b2_ref[...]
    o_ref[0] = z.astype(o_ref.dtype)            # (Cout, H*W)


def sideout_block(x_nchw, w1_hwio, bn_gamma, bn_beta, bn_mean, bn_var,
                  w2_io, b2, *, eps=1e-5, compute_dtype=jnp.float32):
    """Forward pass of SideoutBlock.

    x_nchw : (N, Cin, H, W) float32
    w1_hwio: (3, 3, Cin, Cin) float32   (3x3 conv, padding=1, stride=1, no bias)
    w2_io  : (Cin, Cout) float32        (1x1 conv)
    b2     : (Cout,) float32
    compute_dtype: matmul-operand dtype (jnp.bfloat16 recommended on v6e/v7x);
                   accumulation and elementwise math stay float32.
    returns (N, Cout, H, W) float32
    """
    N, Cin, H, W = x_nchw.shape
    Cout = w2_io.shape[1]
    HW = H * W

    # Fold BatchNorm (eval mode) into a per-channel scale/bias; fold the scale
    # straight into the conv1 weights (removes a per-pixel VPU multiply).
    scale = bn_gamma / jnp.sqrt(bn_var + eps)                         # (Cin,)
    bias1 = (bn_beta - bn_mean * scale).reshape(Cin, 1).astype(jnp.float32)

    w1s = w1_hwio.astype(jnp.float32) * scale[None, None, None, :]    # (3,3,Cin,Cin)
    # Pack as (Cout1=Cin, 9*Cin), column index = tap*Cin + in_channel
    # (matches the kernel's im2col row ordering).
    w1_mat = jnp.transpose(w1s.reshape(9, Cin, Cin), (2, 0, 1)).reshape(Cin, 9 * Cin)
    w1_mat = w1_mat.astype(compute_dtype)

    w2_t = jnp.transpose(w2_io.astype(jnp.float32)).astype(compute_dtype)  # (Cout, Cin)
    b2_col = b2.reshape(Cout, 1).astype(jnp.float32)

    # Lane-dense activations: NCHW -> (N, Cin, H*W) is a contiguous reshape
    # (no transpose, no pad, no extra HBM round trip).
    x_flat = x_nchw.reshape(N, Cin, HW).astype(compute_dtype)

    # Host-precomputed padding=1 boundary masks: mask[k, p] = 1 iff flat spatial
    # position p shifted by tap k stays inside the image (no in-kernel int math).
    rows = np.arange(HW, dtype=np.int64) // W
    cols = np.arange(HW, dtype=np.int64) % W
    masks = np.zeros((9, HW), dtype=np.float32)
    for ky in range(3):
        for kx in range(3):
            dy, dx = ky - 1, kx - 1
            r = rows + dy
            c = cols + dx
            masks[ky * 3 + kx] = ((r >= 0) & (r < H) & (c >= 0) & (c < W))
    mask_arr = jnp.asarray(masks)

    kernel = functools.partial(_sideout_kernel, W=W)

    flops = 2 * N * HW * (9 * Cin * Cin + Cin * Cout)
    bytes_accessed = (x_flat.size * x_flat.dtype.itemsize
                      + w1_mat.size * w1_mat.dtype.itemsize
                      + w2_t.size * w2_t.dtype.itemsize
                      + mask_arr.size * mask_arr.dtype.itemsize
                      + (Cin + Cout) * 4
                      + N * Cout * HW * 4)

    out_flat = pl.pallas_call(
        kernel,
        out_shape=jax.ShapeDtypeStruct((N, Cout, HW), jnp.float32),
        grid_spec=pltpu.PrefetchScalarGridSpec(
            num_scalar_prefetch=0,
            grid=(N,),
            in_specs=[
                pl.BlockSpec((9, HW), lambda n: (0, 0)),            # boundary masks
                pl.BlockSpec((1, Cin, HW), lambda n: (n, 0, 0)),    # x (one image)
                pl.BlockSpec((Cin, 9 * Cin), lambda n: (0, 0)),     # w1 (BN folded)
                pl.BlockSpec((Cin, 1), lambda n: (0, 0)),           # bn bias
                pl.BlockSpec((Cout, Cin), lambda n: (0, 0)),        # w2^T
                pl.BlockSpec((Cout, 1), lambda n: (0, 0)),          # b2
            ],
            out_specs=pl.BlockSpec((1, Cout, HW), lambda n: (n, 0, 0)),
        ),
        compiler_params=pltpu.CompilerParams(
            dimension_semantics=("parallel",)),
        cost_estimate=pl.CostEstimate(flops=flops, transcendentals=0,
                                      bytes_accessed=bytes_accessed),
    )(mask_arr, x_flat, w1_mat, bias1, w2_t, b2_col)

    # (N, Cout, H*W) -> (N, Cout, H, W): contiguous reshape, matches PyTorch NCHW.
    return out_flat.reshape(N, Cout, H, W)


if __name__ == "__main__":
    # Small shapes consistent with the module: in_channels=4, out_channels=2.
    N, Cin, Cout, H, W = 2, 4, 2, 16, 16

    key = jax.random.PRNGKey(0)
    kx_, kw1, kg, kb, km, kv, kw2, kb2 = jax.random.split(key, 8)

    x = jax.random.normal(kx_, (N, Cin, H, W), dtype=jnp.float32)

    # conv1: Conv2d(Cin, Cin, 3, padding=1, bias=False) weights as HWIO.
    w1 = jax.random.normal(kw1, (3, 3, Cin, Cin), dtype=jnp.float32) * 0.1
    # BatchNorm2d(Cin) parameters / running stats (deterministic, nontrivial).
    bn_gamma = 1.0 + 0.1 * jax.random.normal(kg, (Cin,), dtype=jnp.float32)
    bn_beta = 0.1 * jax.random.normal(kb, (Cin,), dtype=jnp.float32)
    bn_mean = 0.1 * jax.random.normal(km, (Cin,), dtype=jnp.float32)
    bn_var = jnp.abs(jax.random.normal(kv, (Cin,), dtype=jnp.float32)) + 0.5
    # conv2: Conv2d(Cin, Cout, 1) with bias.
    w2 = jax.random.normal(kw2, (Cin, Cout), dtype=jnp.float32) * 0.1
    b2 = 0.1 * jax.random.normal(kb2, (Cout,), dtype=jnp.float32)

    # f32 path.
    out = sideout_block(x, w1, bn_gamma, bn_beta, bn_mean, bn_var, w2, b2)
    out = jax.block_until_ready(out)
    assert out.shape == (N, Cout, H, W), out.shape

    # Plain-JAX reference (lax convolutions), mirrors the PyTorch module in eval mode.
    x_nhwc = jnp.transpose(x, (0, 2, 3, 1))
    ref = jax.lax.conv_general_dilated(
        x_nhwc, w1, window_strides=(1, 1), padding=((1, 1), (1, 1)),
        dimension_numbers=("NHWC", "HWIO", "NHWC"))
    scale = bn_gamma / jnp.sqrt(bn_var + 1e-5)
    ref = ref * scale + (bn_beta - bn_mean * scale)
    ref = jnp.maximum(ref, 0.0)
    ref = jnp.einsum("nhwc,co->nhwo", ref, w2) + b2
    ref = jnp.transpose(ref, (0, 3, 1, 2))
    assert jnp.allclose(out, ref, atol=1e-4, rtol=1e-4)

    # bf16-operand path (v6e/v7x MXU + halved DMA bytes), f32 accumulation.
    out_bf16 = sideout_block(x, w1, bn_gamma, bn_beta, bn_mean, bn_var, w2, b2,
                             compute_dtype=jnp.bfloat16)
    out_bf16 = jax.block_until_ready(out_bf16)
    assert jnp.allclose(out_bf16, ref, atol=5e-2, rtol=5e-2)

    print("KERNEL_OK")
</pallas_src>

<mosaic_0001>
module attributes {stable_mosaic.version = 11 : i64} {
  func.func @_sideout_kernel(%arg0: i32, %arg1: memref<9x256xf32, #tpu.memory_space<vmem>>, %arg2: memref<1x4x256xf32, #tpu.memory_space<vmem>>, %arg3: memref<4x36xf32, #tpu.memory_space<vmem>>, %arg4: memref<4x1xf32, #tpu.memory_space<vmem>>, %arg5: memref<2x4xf32, #tpu.memory_space<vmem>>, %arg6: memref<2x1xf32, #tpu.memory_space<vmem>>, %arg7: memref<1x2x256xf32, #tpu.memory_space<vmem>>) attributes {dimension_semantics = [#tpu.dimension_semantics<parallel>], iteration_bounds = array<i64: 2>, scalar_prefetch = 0 : i64, scratch_operands = 0 : i64, tpu.core_type = #tpu.core_type<tc>, window_params = [{pipeline_mode = #tpu.pipeline_mode<synchronous>, transform_indices = @transform_0, window_bounds = array<i64: 9, 256>}, {transform_indices = @transform_1, window_bounds = array<i64: 1, 4, 256>}, {pipeline_mode = #tpu.pipeline_mode<synchronous>, transform_indices = @transform_2, window_bounds = array<i64: 4, 36>}, {pipeline_mode = #tpu.pipeline_mode<synchronous>, transform_indices = @transform_3, window_bounds = array<i64: 4, 1>}, {pipeline_mode = #tpu.pipeline_mode<synchronous>, transform_indices = @transform_4, window_bounds = array<i64: 2, 4>}, {pipeline_mode = #tpu.pipeline_mode<synchronous>, transform_indices = @transform_5, window_bounds = array<i64: 2, 1>}, {transform_indices = @transform_6, window_bounds = array<i64: 1, 2, 256>}]} {
    %c0 = arith.constant 0 : index
    %c0_0 = arith.constant 0 : index
    %c0_1 = arith.constant 0 : index
    %0 = vector.load %arg2[%c0, %c0_0, %c0_1] : memref<1x4x256xf32, #tpu.memory_space<vmem>>, vector<1x4x256xf32>
    %1 = vector.shape_cast %0 : vector<1x4x256xf32> to vector<4x256xf32>
    %2 = vector.extract_strided_slice %1 {offsets = [0, 239], sizes = [4, 17], strides = [1, 1]} : vector<4x256xf32> to vector<4x17xf32>
    %3 = vector.extract_strided_slice %1 {offsets = [0, 0], sizes = [4, 239], strides = [1, 1]} : vector<4x256xf32> to vector<4x239xf32>
    %4 = tpu.concatenate %2, %3 in 1 : vector<4x17xf32>, vector<4x239xf32> -> vector<4x256xf32>
    %c0_2 = arith.constant 0 : index
    %c0_3 = arith.constant 0 : index
    %5 = vector.load %arg1[%c0_2, %c0_3] : memref<9x256xf32, #tpu.memory_space<vmem>>, vector<1x256xf32>
    %6 = vector.broadcast %5 : vector<1x256xf32> to vector<4x256xf32>
    %7 = arith.mulf %4, %6 : vector<4x256xf32>
    %8 = vector.extract_strided_slice %1 {offsets = [0, 240], sizes = [4, 16], strides = [1, 1]} : vector<4x256xf32> to vector<4x16xf32>
    %9 = vector.extract_strided_slice %1 {offsets = [0, 0], sizes = [4, 240], strides = [1, 1]} : vector<4x256xf32> to vector<4x240xf32>
    %10 = tpu.concatenate %8, %9 in 1 : vector<4x16xf32>, vector<4x240xf32> -> vector<4x256xf32>
    %c1 = arith.constant 1 : index
    %c0_4 = arith.constant 0 : index
    %11 = vector.load %arg1[%c1, %c0_4] : memref<9x256xf32, #tpu.memory_space<vmem>>, vector<1x256xf32>
    %12 = vector.broadcast %11 : vector<1x256xf32> to vector<4x256xf32>
    %13 = arith.mulf %10, %12 : vector<4x256xf32>
    %14 = vector.extract_strided_slice %1 {offsets = [0, 241], sizes = [4, 15], strides = [1, 1]} : vector<4x256xf32> to vector<4x15xf32>
    %15 = vector.extract_strided_slice %1 {offsets = [0, 0], sizes = [4, 241], strides = [1, 1]} : vector<4x256xf32> to vector<4x241xf32>
    %16 = tpu.concatenate %14, %15 in 1 : vector<4x15xf32>, vector<4x241xf32> -> vector<4x256xf32>
    %c2 = arith.constant 2 : index
    %c0_5 = arith.constant 0 : index
    %17 = vector.load %arg1[%c2, %c0_5] : memref<9x256xf32, #tpu.memory_space<vmem>>, vector<1x256xf32>
    %18 = vector.broadcast %17 : vector<1x256xf32> to vector<4x256xf32>
    %19 = arith.mulf %16, %18 : vector<4x256xf32>
    %20 = vector.extract_strided_slice %1 {offsets = [0, 255], sizes = [4, 1], strides = [1, 1]} : vector<4x256xf32> to vector<4x1xf32>
    %21 = vector.extract_strided_slice %1 {offsets = [0, 0], sizes = [4, 255], strides = [1, 1]} : vector<4x256xf32> to vector<4x255xf32>
    %22 = tpu.concatenate %20, %21 in 1 : vector<4x1xf32>, vector<4x255xf32> -> vector<4x256xf32>
    %c3 = arith.constant 3 : index
    %c0_6 = arith.constant 0 : index
    %23 = vector.load %arg1[%c3, %c0_6] : memref<9x256xf32, #tpu.memory_space<vmem>>, vector<1x256xf32>
    %24 = vector.broadcast %23 : vector<1x256xf32> to vector<4x256xf32>
    %25 = arith.mulf %22, %24 : vector<4x256xf32>
    %26 = vector.extract_strided_slice %1 {offsets = [0, 1], sizes = [4, 255], strides = [1, 1]} : vector<4x256xf32> to vector<4x255xf32>
    %27 = vector.extract_strided_slice %1 {offsets = [0, 0], sizes = [4, 1], strides = [1, 1]} : vector<4x256xf32> to vector<4x1xf32>
    %28 = tpu.concatenate %26, %27 in 1 : vector<4x255xf32>, vector<4x1xf32> -> vector<4x256xf32>
    %c5 = arith.constant 5 : index
    %c0_7 = arith.constant 0 : index
    %29 = vector.load %arg1[%c5, %c0_7] : memref<9x256xf32, #tpu.memory_space<vmem>>, vector<1x256xf32>
    %30 = vector.broadcast %29 : vector<1x256xf32> to vector<4x256xf32>
    %31 = arith.mulf %28, %30 : vector<4x256xf32>
    %32 = vector.extract_strided_slice %1 {offsets = [0, 15], sizes = [4, 241], strides = [1, 1]} : vector<4x256xf32> to vector<4x241xf32>
    %33 = vector.extract_strided_slice %1 {offsets = [0, 0], sizes = [4, 15], strides = [1, 1]} : vector<4x256xf32> to vector<4x15xf32>
    %34 = tpu.concatenate %32, %33 in 1 : vector<4x241xf32>, vector<4x15xf32> -> vector<4x256xf32>
    %c6 = arith.constant 6 : index
    %c0_8 = arith.constant 0 : index
    %35 = vector.load %arg1[%c6, %c0_8] : memref<9x256xf32, #tpu.memory_space<vmem>>, vector<1x256xf32>
    %36 = vector.broadcast %35 : vector<1x256xf32> to vector<4x256xf32>
    %37 = arith.mulf %34, %36 : vector<4x256xf32>
    %38 = vector.extract_strided_slice %1 {offsets = [0, 16], sizes = [4, 240], strides = [1, 1]} : vector<4x256xf32> to vector<4x240xf32>
    %39 = vector.extract_strided_slice %1 {offsets = [0, 0], sizes = [4, 16], strides = [1, 1]} : vector<4x256xf32> to vector<4x16xf32>
    %40 = tpu.concatenate %38, %39 in 1 : vector<4x240xf32>, vector<4x16xf32> -> vector<4x256xf32>
    %c7 = arith.constant 7 : index
    %c0_9 = arith.constant 0 : index
    %41 = vector.load %arg1[%c7, %c0_9] : memref<9x256xf32, #tpu.memory_space<vmem>>, vector<1x256xf32>
    %42 = vector.broadcast %41 : vector<1x256xf32> to vector<4x256xf32>
    %43 = arith.mulf %40, %42 : vector<4x256xf32>
    %44 = vector.extract_strided_slice %1 {offsets = [0, 17], sizes = [4, 239], strides = [1, 1]} : vector<4x256xf32> to vector<4x239xf32>
    %45 = vector.extract_strided_slice %1 {offsets = [0, 0], sizes = [4, 17], strides = [1, 1]} : vector<4x256xf32> to vector<4x17xf32>
    %46 = tpu.concatenate %44, %45 in 1 : vector<4x239xf32>, vector<4x17xf32> -> vector<4x256xf32>
    %c8 = arith.constant 8 : index
    %c0_10 = arith.constant 0 : index
    %47 = vector.load %arg1[%c8, %c0_10] : memref<9x256xf32, #tpu.memory_space<vmem>>, vector<1x256xf32>
    %48 = vector.broadcast %47 : vector<1x256xf32> to vector<4x256xf32>
    %49 = arith.mulf %46, %48 : vector<4x256xf32>
    %50 = tpu.concatenate %7, %13, %19, %25, %1, %31, %37, %43, %49 in 0 : vector<4x256xf32>, vector<4x256xf32>, vector<4x256xf32>, vector<4x256xf32>, vector<4x256xf32>, vector<4x256xf32>, vector<4x256xf32>, vector<4x256xf32>, vector<4x256xf32> -> vector<36x256xf32>
    %c0_11 = arith.constant 0 : index
    %c0_12 = arith.constant 0 : index
    %51 = vector.load %arg3[%c0_11, %c0_12] : memref<4x36xf32, #tpu.memory_space<vmem>>, vector<4x36xf32>
    %cst = arith.constant dense<0.000000e+00> : vector<4x256xf32>
    %52 = tpu.matmul %51, %50, %cst {dimension_numbers = #tpu.dot_dimension_numbers<[1], [0], [0], [1], [0, 0, 1, 1], [], []>} : vector<4x36xf32>, vector<36x256xf32>, vector<4x256xf32> -> vector<4x256xf32>
    %c0_13 = arith.constant 0 : index
    %c0_14 = arith.constant 0 : index
    %53 = vector.load %arg4[%c0_13, %c0_14] : memref<4x1xf32, #tpu.memory_space<vmem>>, vector<4x1xf32>
    %54 = vector.broadcast %53 : vector<4x1xf32> to vector<4x256xf32>
    %55 = arith.addf %52, %54 : vector<4x256xf32>
    %cst_15 = arith.constant 0.000000e+00 : f32
    %56 = vector.broadcast %cst_15 : f32 to vector<4x256xf32>
    %57 = arith.maximumf %55, %56 : vector<4x256xf32>
    %c0_16 = arith.constant 0 : index
    %c0_17 = arith.constant 0 : index
    %58 = vector.load %arg5[%c0_16, %c0_17] : memref<2x4xf32, #tpu.memory_space<vmem>>, vector<2x4xf32>
    %cst_18 = arith.constant dense<0.000000e+00> : vector<2x256xf32>
    %59 = tpu.matmul %58, %57, %cst_18 {dimension_numbers = #tpu.dot_dimension_numbers<[1], [0], [0], [1], [0, 0, 1, 1], [], []>} : vector<2x4xf32>, vector<4x256xf32>, vector<2x256xf32> -> vector<2x256xf32>
    %c0_19 = arith.constant 0 : index
    %c0_20 = arith.constant 0 : index
    %60 = vector.load %arg6[%c0_19, %c0_20] : memref<2x1xf32, #tpu.memory_space<vmem>>, vector<2x1xf32>
    %61 = vector.broadcast %60 : vector<2x1xf32> to vector<2x256xf32>
    %62 = arith.addf %59, %61 : vector<2x256xf32>
    %c0_21 = arith.constant 0 : index
    %c0_22 = arith.constant 0 : index
    %c0_23 = arith.constant 0 : index
    %63 = vector.load %arg7[%c0_21, %c0_22, %c0_23] : memref<1x2x256xf32, #tpu.memory_space<vmem>>, vector<1x2x256xf32>
    %64 = vector.shape_cast %63 : vector<1x2x256xf32> to vector<2x256xf32>
    %65 = vector.shape_cast %62 : vector<2x256xf32> to vector<1x2x256xf32>
    tpu.vector_store %arg7[%c0_21, %c0_22, %c0_23], %65 {strides = array<i32>} : memref<1x2x256xf32, #tpu.memory_space<vmem>>, vector<1x2x256xf32>,
    return
  }
  func.func @transform_0(%arg0: i32) -> (i32, i32) {
    %c0_i32 = arith.constant 0 : i32
    %c0_i32_0 = arith.constant 0 : i32
    %c0_i32_1 = arith.constant 0 : i32
    return %c0_i32, %c0_i32_0 : i32, i32
  }
  func.func @transform_1(%arg0: i32) -> (i32, i32, i32) {
    %c0_i32 = arith.constant 0 : i32
    %c0_i32_0 = arith.constant 0 : i32
    %c0_i32_1 = arith.constant 0 : i32
    return %arg0, %c0_i32, %c0_i32_0 : i32, i32, i32
  }
  func.func @transform_2(%arg0: i32) -> (i32, i32) {
    %c0_i32 = arith.constant 0 : i32
    %c0_i32_0 = arith.constant 0 : i32
    %c0_i32_1 = arith.constant 0 : i32
    return %c0_i32, %c0_i32_0 : i32, i32
  }
  func.func @transform_3(%arg0: i32) -> (i32, i32) {
    %c0_i32 = arith.constant 0 : i32
    %c0_i32_0 = arith.constant 0 : i32
    %c0_i32_1 = arith.constant 0 : i32
    return %c0_i32, %c0_i32_0 : i32, i32
  }
  func.func @transform_4(%arg0: i32) -> (i32, i32) {
    %c0_i32 = arith.constant 0 : i32
    %c0_i32_0 = arith.constant 0 : i32
    %c0_i32_1 = arith.constant 0 : i32
    return %c0_i32, %c0_i32_0 : i32, i32
  }
  func.func @transform_5(%arg0: i32) -> (i32, i32) {
    %c0_i32 = arith.constant 0 : i32
    %c0_i32_0 = arith.constant 0 : i32
    %c0_i32_1 = arith.constant 0 : i32
    return %c0_i32, %c0_i32_0 : i32, i32
  }
  func.func @transform_6(%arg0: i32) -> (i32, i32, i32) {
    %c0_i32 = arith.constant 0 : i32
    %c0_i32_0 = arith.constant 0 : i32
    %c0_i32_1 = arith.constant 0 : i32
    return %arg0, %c0_i32, %c0_i32_0 : i32, i32, i32
  }
}

</mosaic_0001>

<bundles_post_ra>
// kernel: tpu_custom_call.1
= control target key start
LH: loop header
LB: loop body
LE: loop exit
PB: predicated region body
PF: predicated region fallthrough
CT: control target
= control target key end

     0   :  { %s1306_s0 = inlined_call_operand.hbm [shape: f32[9,256], index: 0, kind: input, shape index: {}]   ;;  %s1307_s1 = inlined_call_operand.hbm [shape: f32[2,4,256], index: 1, kind: input, shape index: {}]   ;;  %s1308_s2 = inlined_call_operand.vmem [shape: f32[4,36], index: 2, kind: input, shape index: {}]   ;;  %s1309_s3 = inlined_call_operand.vmem [shape: f32[4,1], index: 3, kind: input, shape index: {}]   ;;  %s1310_s4 = inlined_call_operand.vmem [shape: f32[2,4], index: 4, kind: input, shape index: {}]   ;;  %s1311_s5 = inlined_call_operand.vmem [shape: f32[2,1], index: 5, kind: input, shape index: {}]   ;;  %s1312_s6 = inlined_call_operand.hbm [shape: f32[2,2,256], index: 6, kind: output, shape index: {}]  }
   0x1   :  { %1317 = sst [smem:[#allocation11_spill]] %s1306_s0 }
   0x2   :  { %11 = vsyncpa [#allocation3], 0 }
   0x3   :  { %12 = vsyncpa [#allocation6], 0 }
   0x4   :  { %14 = vsyncpa [#allocation6 + $0x1], 0 }
   0x5   :  { %15 = vsyncpa [#allocation4], 0 }
   0x6   :  { %17 = vsyncpa [#allocation4 + $0x1], 0  ;;  %s1077_s21 = smov 0   ;;  %s1079_s22 = smov 0  }
   0x7   :  { %s1081_s23 = smov 0   ;;  %s1083_s24 = smov 0  }
   0x8 LB: > { %s1098_s25 = sadd.s32 4294967295, %s1025_s24   ;;  %s806_s26 = sadd.s32 4294967294, %s1025_s24   ;;  %s1025_s24 = sphi %s1083_s24, %s1336_s24   ;;  %s1021_s23 = sphi %s1081_s23, %s1335_s23   ;;  %s1017_s22 = sphi %s1079_s22, %s1334_s22   ;;  %s1013_s21 = sphi %s1077_s21, %s1333_s21  }
   0x9   : > { %p64_p0 = scmp.ne.s32.totalorder %s1017_s22, %s1013_s21  ;;  %p1313_p1 = scmp.eq.s32.totalorder %s1098_s25, 0 }
   0xa   : > { %p178_p3 = scmp.eq.s32.totalorder %s806_s26, 1  ;;  %p807_p5 = scmp.ge.s32.totalorder %s1025_s24, 1 }
   0xb   : > { %p1107_p4 = por %p1313_p1, %p64_p0  ;;  %p185_p7 = scmp.lt.s32.totalorder %s1025_s24, 3 }
   0xc   : > { %p1112_p6 = por %p178_p3, %p64_p0  ;;  %s1027_s30 = smov [#allocation2]  }
   0xd   : > { %s1318_s27 = scalar_select %p1107_p4, 1, 0 }
   0xe   : > { %s1319_s28 = scalar_select %p1112_p6, 1, 0 }
   0xf   : > { %p1117_p8 = pnand %p807_p5, %p185_p7  ;;  %s197_s7 = sshll.u32 %s1027_s30, 4  ;;  %s198_s7 = int_to_ptr.vmem [resolvable:$true] %s197_s7 }
  0x10   : > { %s1131_s9 = sadd.s32 1, %s1025_s24   ;;  %s51_s10 = sadd.s32 1, %s1021_s23 }
  0x11   : > { %s1320_s29 = scalar_select %p1117_p8, 1, 0 }
  0x12   : > { %p839_p9 = pneg %p1117_p8  ;;  %s48_s11 = ssub.s32 %s1025_s24, %s1131_s9 }
  0x13   : > { %s914_s12 = scalar_lea.vmem %s198_s7, 512  ;;  %p922_p5 = scmp.lt.s32.totalorder %s198_s7, %s198_s7 }
  0x14   : > { %p1126_p11 = pnand %p839_p9, %p1313_p1  ;;  %p915_p13 = scmp.ne.s32.totalorder %s198_s7, %s914_s12 }
  0x15   : > { %p923_p7 = scmp.lt.s32.totalorder %s914_s12, %s914_s12 }
  0x16   : > { %p905_p12 = pneg %p1126_p11 }
  0x17   : > { %p924_p10 = por %p923_p7, %p922_p5 }
  0x18   : > { %p917_p0 = pnand %p915_p13, %p905_p12 }
  0x1a   : > { %p918_p3 = pneg %p917_p0 }
  0x1c   : > { %p925_p2 = pnand %p924_p10, %p918_p3 }
  0x1e   : > { %928 = shalt.err (!%p925_p2)
}
  0x1f   : > { %s1028_s13 = smov 256   ;;  %s1029_s14 = smov 16  }
  0x20   : > { %s1322_s0 = sld [smem:[#allocation11_spill]]  ;;  %p49_p9 = scmp.eq.s32.totalorder %s48_s11, 0 }
  0x21   : > { %p58_p12 = scmp.ne.s32.totalorder %s1021_s23, %s1017_s22  ;;  %p59_p10 = scmp.eq.s32.totalorder %s1025_s24, 0 }
  0x22   : > { %p852_p2 = scmp.lt.s32.totalorder %s1025_s24, 2  ;;  %p1323_p0 = scmp.eq.s32.totalorder %s1098_s25, 1 }
  0x23   : > { %s1148_s17 = scalar_select %p49_p9, %s1021_s23, %s51_s10  }
  0x24   : > { %p60_p13 = por %p59_p10, %p58_p12  ;;  %p1152_p3 = por %p1323_p0, %p58_p12 }
  0x25   : > { %s223_s19 = sand.u32 1, %s1021_s23   ;;  %s829_s20 = sshll.u32 %s1025_s24, 7 }
  0x26   : > { %842 = dma.hbm_to_vmem [thread:$0]  (!%p1126_p11), %s1322_s0, 512, %s198_s7, [#allocation3], %s1028_s13, %s1028_s13, %s1029_s14  }
  0x27   : > { %s1324_s18 = scalar_select %p1152_p3, 1, 0 }
  0x28   : > { %s810_s26 = sshll.u32 %s223_s19, 3  ;;  %s1161_s12 = scalar_lea.hbm %s1307_s1, %s829_s20 }
  0x29   : > { %s227_s7 = scalar_lea.vmem [#allocation5], %s810_s26  ;;  %p1163_p11 = pnand %p852_p2, %p60_p13 }
  0x2a   : > { %s235_s10 = sshll.u32 %s227_s7, 4  ;;  %s224_s13 = scalar_lea.sflag [#allocation6], %s223_s19  ;;  %s236_s10 = int_to_ptr.vmem [resolvable:$true] %s235_s10 }
  0x2b   : > { %s929_s14 = scalar_lea.hbm %s1161_s12, 128  ;;  %p931_p7 = pneg %p1163_p11 }
  0x2c   : > { %p930_p5 = scmp.ne.s32.totalorder %s1161_s12, %s929_s14  ;;  %s934_s20 = scalar_lea.hbm %s1307_s1, 256 }
  0x2d   : > { %p935_p10 = scmp.lt.s32.totalorder %s1161_s12, %s1307_s1  ;;  %p936_p2 = scmp.lt.s32.totalorder %s934_s20, %s929_s14 }
  0x2e   : > { %p932_p9 = pnand %p931_p7, %p930_p5 }
  0x2f   : > { %p937_p13 = por %p936_p2, %p935_p10 }
  0x30   : > { %p933_p12 = pneg %p932_p9 }
  0x32   : > { %p938_p0 = pnand %p937_p13, %p933_p12 }
  0x34   : > { %941 = shalt.err (!%p938_p0)
}
  0x35   : > { %s942_s8 = scalar_lea.vmem %s236_s10, 128  ;;  %s1030_s19 = smov [#allocation5]  }
  0x36   : > { %p943_p1 = scmp.ne.s32.totalorder %s236_s10, %s942_s8  ;;  %s947_s7 = sshll.u32 %s1030_s19, 4  ;;  %s948_s7 = int_to_ptr.vmem [resolvable:$false] %s947_s7 }
  0x37   : > { %s949_s0 = scalar_lea.vmem %s948_s7, 256  ;;  %p950_p5 = scmp.lt.s32.totalorder %s236_s10, %s948_s7 }
  0x38   : > { %p945_p6 = pnand %p943_p1, %p931_p7  ;;  %p951_p9 = scmp.lt.s32.totalorder %s949_s0, %s942_s8 }
  0x3a   : > { %p946_p3 = pneg %p945_p6  ;;  %p952_p4 = por %p951_p9, %p950_p5 }
  0x3c   : > { %p953_p8 = pnand %p952_p4, %p946_p3 }
  0x3e   : > { %956 = shalt.err (!%p953_p8)
}
  0x3f   : > { %846 = dma.hbm_to_vmem [thread:$0]  (!%p1163_p11), %s1161_s12, 128, %s236_s10, %s224_s13  }
  0x40   : > { %p1326_p12 = scmp.ne.s32.totalorder %s1320_s29, 0 }
  0x41   : > { %p1327_p10 = scmp.eq.s32.totalorder (!%p1326_p12), %s1098_s25, 0 }
  0x42   : > { %244 = sbr.rel (%p1326_p12) target bundleno = 639 (0x27f), region = 44 }
  0x47   : > { %1000 = dma.done.wait (%p1327_p10), [#allocation3], 512   ;;  %p1328_p1 = pmov %p1327_p10 }
  0x48   : > { %s1188_s14 = sand.u32 1, %s1017_s22   ;;  %p1329_p4 = scmp.ne.s32.totalorder %s1318_s27, 0 }
  0x49   : > { %1002 = vsyncadd (%p1328_p1), [#allocation3], 4294966784  ;;  %s815_s0 = sshll.u32 %s1188_s14, 3  ;;  %s251_s15 = scalar_lea.sflag [#allocation6], %s1188_s14 }
  0x4a   : > { %s254_s11 = scalar_lea.vmem [#allocation5], %s815_s0 }
  0x4b   : > { %1004 = dma.done.wait (%p1329_p4), %s251_s15, 128  }
  0x4c   : > { %1006 = vsyncadd (%p1329_p4), %s251_s15, 4294967168  ;;  %v1196_v0 = vld [vmem:[%s254_s11] sm:$0xff]  ;;  %s1031_s29 = smov 111   ;;  %s1032_s12 = smov 112   ;;  %v1037_v2 = vmov 0.0   ;;  %v1038_v3 = vmov 0   ;;  %v298_v5 = vlaneseq }
  0x4d   : > { %460 = vrot.lane.b32.xlu1 %v1196_v0, %s1031_s29  ;;  %435 = vrot.lane.b32.xlu0 %v1196_v0, %s1032_s12  ;;  %v1202_v1 = vcombine.high %v1196_v0, %v1196_v0  ;;  %s1033_s10 = smov 127   ;;  %s1034_s27 = smov 113   ;;  %v520_v4 = vld [vmem:[%s1309_s3] sm:$0xf]  ;;  %vm464_vm0 = vcmask 908288   ;;  %vm510_vm1 = vcmask 1043456  }
  0x4e   : > { %s1035_s13 = smov 1   ;;  %s1036_s16 = smov 16   ;;  %600 = vmatprep.mubr.f32.mxu0 %v1037_v2  ;;  %690 = vmatprep.mubr.f32.mxu1 %v1037_v2  ;;  %v299_v6 = vshrl.u32 %v298_v5, 7  ;;  %v471_v9 = vld [vmem:[#allocation2 + $0x10] ss:$8 sm:$0x3] }
  0x4f   : > { %900 = vset.pattern.permute.xlu0 %v1038_v3  ;;  %901 = vset.pattern.permute.xlu1 %v1038_v3  ;;  %s1039_s20 = smov 15   ;;  %s1040_s30 = smov 17   ;;  %v396_v14 = vld [vmem:[#allocation2 + $0x5] ss:$8 sm:$0x3]  ;;  %vm389_vm2 = vcmask 1039360  }
  0x50   : > { %v1221_v7 = vsub.s32 0, %v299_v6  ;;  %v1223_v8 = vsub.s32 1, %v299_v6  ;;  %v446_v15 = vld [vmem:[#allocation2 + $0x7] ss:$8 sm:$0x3]  ;;  %vm439_vm3 = vcmask 916480  }
  0x51   : > { %385 = vrot.lane.b32.xlu0 %v1196_v0, %s1033_s10  ;;  %462 = vrot.lane.b32.xlu1 %v1202_v1, %s1031_s29  ;;  %v421_v21 = vld [vmem:[#allocation2 + $0x6] ss:$8 sm:$0x3]  ;;  %vm414_vm4 = vcmask 924672   ;;  %vm365_vm5 = vcmask 7168   ;;  %vm315_vm6 = vcmask 130048  }
  0x52   : > { %v476_v12 = vrot.slane %v471_v9, %v1221_v7  ;;  %v480_v13 = vrot.slane %v471_v9, %v1223_v8  ;;  %v405_v20 = vrot.slane %v396_v14, %v1223_v8  ;;  %v451_v24 = vrot.slane %v446_v15, %v1221_v7  ;;  %v371_v48 = vld [vmem:[#allocation2 + $0x3] ss:$8 sm:$0x3]  ;;  %v321_v59 = vld [vmem:[#allocation2 + $0x1] ss:$8 sm:$0x3] }
  0x53   : > { %v455_v25 = vrot.slane %v446_v15, %v1223_v8  ;;  %v401_v26 = vrot.slane %v396_v14, %v1221_v7  ;;  %v426_v29 = vrot.slane %v421_v21, %v1221_v7  ;;  %v430_v37 = vrot.slane %v421_v21, %v1223_v8  ;;  %v346_v61 = vld [vmem:[#allocation2 + $0x2] ss:$8 sm:$0x3]  ;;  %v296_v5 = vld [vmem:[#allocation2] ss:$8 sm:$0x3] }
  0x54   : > { %v376_v54 = vrot.slane %v371_v48, %v1221_v7  ;;  %v380_v55 = vrot.slane %v371_v48, %v1223_v8  ;;  %v330_v6 = vrot.slane %v321_v59, %v1223_v8  ;;  %vm340_vm7 = vcmask 121856   ;;  %s710_s26 = scalar_lea.sflag [#allocation4], %s1188_s14  ;;  %p1330_p8 = scmp.ne.s32.totalorder %s1324_s18, 0 }
  0x55   : > { %387 = vrot.lane.b32.xlu1 %v1202_v1, %s1033_s10  ;;  %437 = vrot.lane.b32.xlu0 %v1202_v1, %s1032_s12  ;;  %v355_v9 = vrot.slane %v346_v61, %v1223_v8  ;;  %vm291_vm8 = vcmask 138240   ;;  %v305_v14 = vrot.slane %v296_v5, %v1223_v8  ;;  %vm526_vm9 = vcmask 293888   ;;  %s816_s12 = sshll.u32 %s1188_s14, 2  ;;  %s830_s10 = sshll.u32 %s1098_s25, 6 }
  0x56   : > { %vm616_vm10 = vcmask 31744   ;;  %s1041_s19 = smov [#allocation7]  }
  0x57   : > { %s961_s7 = sshll.u32 %s1041_s19, 4  ;;  %s962_s7 = int_to_ptr.vmem [resolvable:$false] %s961_s7 }
  0x58   : > { %s963_s25 = scalar_lea.vmem %s962_s7, 128 }
  0x59   : > { %412 = vrot.lane.b32.xlu1 %v1202_v1, %s1034_s27  ;;  %410 = vrot.lane.b32.xlu0 %v1196_v0, %s1034_s27  ;;  %s282_s27 = scalar_lea.vmem [#allocation7], %s816_s12 }
  0x5d   : > { %363 = vrot.lane.b32.xlu1 %v1196_v0, %s1035_s13  ;;  %360 = vrot.lane.b32.xlu0 %v1202_v1, %s1035_s13  ;;  %s724_s13 = sshll.u32 %s282_s27, 4  ;;  %s725_s13 = int_to_ptr.vmem [resolvable:$true] %s724_s13 }
  0x5e   : > { %s957_s8 = scalar_lea.vmem %s725_s13, 64  ;;  %p964_p7 = scmp.lt.s32.totalorder %s725_s13, %s962_s7 }
  0x5f   : > { %p958_p6 = scmp.ne.s32.totalorder %s725_s13, %s957_s8  ;;  %p965_p2 = scmp.lt.s32.totalorder %s963_s25, %s957_s8 }
  0x61   : > { %313 = vrot.lane.b32.xlu1 %v1196_v0, %s1036_s16  ;;  %310 = vrot.lane.b32.xlu0 %v1202_v1, %s1036_s16  ;;  %p959_p3 = pnand %p958_p6, %p1330_p8  ;;  %p966_p13 = por %p965_p2, %p964_p7 }
  0x63   : > { %p960_p11 = pneg %p959_p3 }
  0x65   : > { %338 = vrot.lane.b32.xlu1 %v1196_v0, %s1039_s20  ;;  %335 = vrot.lane.b32.xlu0 %v1202_v1, %s1039_s20  ;;  %p967_p0 = pnand %p966_p13, %p960_p11 }
  0x69   : > { %289 = vrot.lane.b32.xlu1 %v1196_v0, %s1040_s30  ;;  %286 = vrot.lane.b32.xlu0 %v1202_v1, %s1040_s30  ;;  %s722_s30 = scalar_lea.hbm %s1312_s6, %s830_s10 }
  0x6d   : > { %523 = vperm.xlu0 %900, %v520_v4   ;;  %v326_v4 = vrot.slane %v321_v59, %v1221_v7 }
  0xbf   : > { %v461_v10 = vpop.permute.xlu1 %460  ;;  %v436_v11 = vpop.permute.xlu0 %435 }
  0xc3   : > { %v386_v16 = vpop.permute.xlu0 %385  ;;  %v463_v17 = vpop.permute.xlu1 %462 }
  0xc4   : > { %v465_v18 = vsel %vm464_vm0, %v461_v10, %v463_v17  ;;  %v469_v19 = vsel %vm464_vm0, %v463_v17, %v461_v10 }
  0xc5   : > { %v483_v22 = vmul.f32 %v476_v12, %v465_v18  ;;  %v484_v23 = vmul.f32 %v480_v13, %v469_v19  ;;  %v301_v13 = vrot.slane %v296_v5, %v1221_v7 }
  0xc7   : > { %817 = vmatprep.subr.msk.mxu0 %vm510_vm1, %v484_v23  ;;  %v388_v27 = vpop.permute.xlu1 %387  ;;  %v438_v28 = vpop.permute.xlu0 %437 }
  0xc8   : > { %v390_v30 = vsel %vm389_vm2, %v386_v16, %v388_v27  ;;  %v394_v31 = vsel %vm389_vm2, %v388_v27, %v386_v16  ;;  %v440_v32 = vsel %vm439_vm3, %v436_v11, %v438_v28  ;;  %v444_v33 = vsel %vm439_vm3, %v438_v28, %v436_v11  ;;  %818 = vmatpush1.msk.msra.mxu0 %vm510_vm1, %v483_v22 }
  0xc9   : > { %v409_v34 = vmul.f32 %v405_v20, %v394_v31  ;;  %v458_v35 = vmul.f32 %v451_v24, %v440_v32  ;;  %v459_v36 = vmul.f32 %v455_v25, %v444_v33  ;;  %v408_v38 = vmul.f32 %v401_v26, %v390_v30  ;;  %v519_v33 = vld [vmem:[%s1308_s2] sm:$0xf] }
  0xcb   : > { %v413_v39 = vpop.permute.xlu1 %412  ;;  %v411_v40 = vpop.permute.xlu0 %410  ;;  %v501_v41 = vrot.slane %v409_v34, 4  ;;  %v506_v44 = vrot.slane %v458_v35, 4  ;;  %v507_v45 = vrot.slane %v459_v36, 4  ;;  %v500_v49 = vrot.slane %v408_v38, 4  ;;  %v610_v34 = vld [vmem:[%s1311_s5] sm:$0x3] }
  0xcc   : > { %v415_v42 = vsel %vm414_vm4, %v411_v40, %v413_v39  ;;  %v419_v43 = vsel %vm414_vm4, %v413_v39, %v411_v40  ;;  %613 = vperm.xlu1 %901, %v610_v34  }
  0xcd   : > { %v433_v46 = vmul.f32 %v426_v29, %v415_v42  ;;  %v434_v47 = vmul.f32 %v430_v37, %v419_v43  ;;  %v516_v58 = vsel %vm510_vm1, %v1202_v1, %v501_v41  ;;  %v515_v60 = vsel %vm510_vm1, %v1196_v0, %v500_v49  ;;  %v609_v42 = vld [vmem:[%s1310_s4] sm:$0x3] }
  0xce   : > { %v351_v1 = vrot.slane %v346_v61, %v1221_v7 }
  0xcf   : > { %v364_v50 = vpop.permute.xlu1 %363  ;;  %v361_v51 = vpop.permute.xlu0 %360  ;;  %v518_v52 = vsel %vm510_vm1, %v434_v47, %v507_v45  ;;  %v517_v53 = vsel %vm510_vm1, %v433_v46, %v506_v44 }
  0xd0   : > { %560 = vmatprep.subr.mxu0 %v518_v52  ;;  %v366_v56 = vsel %vm365_vm5, %v364_v50, %v361_v51  ;;  %v369_v57 = vsel %vm365_vm5, %v361_v51, %v364_v50 }
  0xd1   : > { %561 = vmatpush1.msra.mxu0 %v517_v53  ;;  %v383_v2 = vmul.f32 %v376_v54, %v369_v57  ;;  %v384_v3 = vmul.f32 %v380_v55, %v366_v56 }
  0xd2   : > { %562 = vmatprep.subr.mxu0 %v516_v58 }
  0xd3   : > { %v314_v62 = vpop.permute.xlu1 %313  ;;  %563 = vmatpush1.msra.mxu0 %v515_v60  ;;  %v311_v63 = vpop.permute.xlu0 %310  ;;  %v493_v15 = vrot.slane %v383_v2, 4  ;;  %v494_v16 = vrot.slane %v384_v3, 4 }
  0xd4   : > { %v316_v10 = vsel %vm315_vm6, %v314_v62, %v311_v63  ;;  %v319_v11 = vsel %vm315_vm6, %v311_v63, %v314_v62 }
  0xd5   : > { %v333_v19 = vmul.f32 %v326_v4, %v319_v11  ;;  %v334_v20 = vmul.f32 %v330_v6, %v316_v10 }
  0xd7   : > { %v339_v0 = vpop.permute.xlu1 %338  ;;  %v336_v12 = vpop.permute.xlu0 %335  ;;  %v487_v8 = vrot.slane %v333_v19, 4  ;;  %v488_v28 = vrot.slane %v334_v20, 4 }
  0xd8   : > { %v341_v17 = vsel %vm340_vm7, %v339_v0, %v336_v12  ;;  %v344_v18 = vsel %vm340_vm7, %v336_v12, %v339_v0 }
  0xd9   : > { %v358_v21 = vmul.f32 %v351_v1, %v344_v18  ;;  %v359_v22 = vmul.f32 %v355_v9, %v341_v17 }
  0xdb   : > { %v290_v23 = vpop.permute.xlu1 %289  ;;  %v287_v24 = vpop.permute.xlu0 %286  ;;  %v514_v25 = vsel %vm510_vm1, %v359_v22, %v494_v16  ;;  %v513_v26 = vsel %vm510_vm1, %v358_v21, %v493_v15 }
  0xdc   : > { %v292_v27 = vsel %vm291_vm8, %v290_v23, %v287_v24  ;;  %v295_v7 = vsel %vm291_vm8, %v287_v24, %v290_v23  ;;  %564 = vmatprep.subr.mxu0 %v514_v25 }
  0xdd   : > { %v308_v29 = vmul.f32 %v301_v13, %v295_v7  ;;  %v309_v30 = vmul.f32 %v305_v14, %v292_v27  ;;  %565 = vmatpush1.msra.mxu0 %v513_v26 }
  0xdf   : > { %v512_v31 = vsel %vm510_vm1, %v309_v30, %v488_v28  ;;  %v511_v32 = vsel %vm510_vm1, %v308_v29, %v487_v8 }
  0xe0   : > { %566 = vmatprep.subr.mxu0 %v512_v31 }
  0xe1   : > { %567 = vmatpush1.msra.mxu0 %v511_v32 }
  0xe2   : > { %819 = vmatmul.mubr.msk.f32.vlgmr.msra.gmra.mxu0 %vm526_vm9, %v519_v33 }
  0xe8   : > { %v524_v35 = vpop.permute.xlu0 %523 }
 0x147   : > { %v614_v43 = vpop.permute.xlu1 %613 }
 0x1a2   : > { %v602_v36 = vpop.f32.mrf.mxu0 }
 0x1a3   : > { %v603_v37 = vadd.f32 %v602_v36, %v524_v35 }
 0x1a4   : > { %v604_v38 = vpop.f32.mrf.mxu0 }
 0x1a5   : > { %v605_v39 = vadd.f32 %v604_v38, %v524_v35  ;;  %v607_v41 = vmax.f32 %v603_v37, 0.0 }
 0x1a7   : > { %v608_v40 = vmax.f32 %v605_v39, 0.0 }
 0x1a9   : > { %820 = vmatprep.subr.msk.mxu1 %vm510_vm1, %v608_v40 }
 0x1aa   : > { %821 = vmatpush1.msk.msra.mxu1 %vm510_vm1, %v607_v41 }
 0x1ab   : > { %822 = vmatmul.mubr.msk.f32.vlgmr.msra.gmra.mxu1 %vm616_vm10, %v609_v42 }
 0x26b   : > { %v692_v44 = vpop.f32.mrf.mxu1 }
 0x26c   : > { %v693_v46 = vadd.f32 %v692_v44, %v614_v43 }
 0x26d   : > { %v694_v45 = vpop.f32.mrf.mxu1 }
 0x26e   : > { %v695_v47 = vadd.f32 %v694_v45, %v614_v43 }
 0x270   : > { %v699_v48 = vcombine.low %v693_v46, %v695_v47 }
 0x272   : > { %823 = vst.sshfl [vmem:[%s282_s27] sm:$0x33 pattern:$0x76325410] %v699_v48 }
 0x273   : > { %970 = shalt.err (!%p967_p0)
}
 0x274   : > { %s971_s0 = scalar_lea.hbm %s722_s30, 64  ;;  %s975_s11 = scalar_lea.hbm %s1312_s6, 128 }
 0x275   : > { %p972_p5 = scmp.ne.s32.totalorder %s722_s30, %s971_s0  ;;  %p976_p10 = scmp.lt.s32.totalorder %s722_s30, %s1312_s6 }
 0x276   : > { %p977_p1 = scmp.lt.s32.totalorder %s975_s11, %s971_s0 }
 0x277   : > { %p973_p9 = pnand %p972_p5, %p1330_p8 }
 0x278   : > { %p978_p4 = por %p977_p1, %p976_p10 }
 0x279   : > { %p974_p12 = pneg %p973_p9 }
 0x27b   : > { %p979_p6 = pnand %p978_p4, %p974_p12 }
 0x27d   : > { %982 = shalt.err (!%p979_p6)
}
 0x27e   : > { %837 = dma.vmem_to_hbm [thread:$0]  (%p1330_p8), %s725_s13, 64, %s722_s30, %s710_s26  }
 0x27f PF: > { %s736_s10 = sand.u32 1, %s1013_s21   ;;  %p1331_p3 = scmp.ne.s32.totalorder %s1319_s28, 0 }
 0x280   : > { %p1332_p11 = scmp.ge.s32.totalorder %s1025_s24, 2  ;;  %s737_s27 = scalar_lea.sflag [#allocation4], %s736_s10 }
 0x282   : > { %p848_p7 = pnand %p1332_p11, %p1331_p3 }
 0x284   : > { %p849_p2 = pneg %p848_p7 }
 0x286   : > { %1008 = dma.done.wait (%p849_p2), %s737_s27, 64  }
 0x287   : > { %1010 = vsyncadd (%p849_p2), %s737_s27, 4294967232  ;;  %p20_p13 = scmp.ge.s32.totalorder %s1131_s9, 4   ;;  %s1333_s21 = smov %s1017_s22 }
 0x288   : > { %s1334_s22 = smov %s1021_s23  ;;  %s1335_s23 = smov %s1148_s17 }
 0x289   : > { %s1336_s24 = smov %s1131_s9  ;;  %22 = sbr.rel (!%p20_p13) target bundleno = 8 (0x8), region = 101 }
 0x28e   :  { %742 = vsyncpa [#allocation3], 1 }
 0x28f   :  { %744 = vsyncpa [#allocation3 + $0x1], 1 }
 0x290   :  { %745 = vsyncpa [#allocation6], 1 }
 0x291   :  { %747 = vsyncpa [#allocation6 + $0x1], 1 }
 0x292   :  { %748 = vsyncpa [#allocation4], 1 }
 0x293   :  { %750 = vsyncpa [#allocation4 + $0x1], 1 }

</bundles_post_ra>
